<compile_context>
chip_gen: v7x
topology: tpu7x:2x2x1
jax: 0.10.0
libtpu: 0.0.40
codegen_flags: <defaults>
</compile_context>

<pallas_src>
import functools

import jax
import jax.numpy as jnp
from jax.experimental import pallas as pl
from jax.experimental.pallas import tpu as pltpu

_SINGLE_K_MAX = 2048            # padded K <= this -> collapse the K grid axis
_COMPUTE_DTYPE = jnp.bfloat16   # streamed operand dtype (f32 MXU accumulation)


def _round_up(x: int, m: int) -> int:
    return ((x + m - 1) // m) * m


def _chip_config():
    """Generation-aware (tm, tn, tk, vmem_limit_bytes) defaults."""
    kind = ""
    try:
        kind = jax.devices()[0].device_kind.lower()
    except Exception:  # pragma: no cover - defensive
        pass
    if "v7" in kind or "7x" in kind:
        # v7x: 3.2 TB/s HBM but only 64 MiB VMEM/TC. 1024x1024 tiles give
        # AI = 512 flops/byte vs ~311 balance, working set ~20-24 MiB.
        return 1024, 1024, 1024, 48 * 1024 * 1024
    if "v6" in kind:
        # v6e: ~918 TF/s / ~1.4 TB/s -> balance ~650 flops/byte; 1024x2048
        # tiles give ~683 flops/byte; working set ~36-40 MiB of 128 MiB VMEM.
        return 1024, 2048, 1024, 96 * 1024 * 1024
    if "v5" in kind and ("lite" in kind or "5e" in kind):
        # v5e: ~197 TF/s / 0.82 TB/s -> balance ~240; 512x1024 gives ~341.
        return 512, 1024, 1024, 96 * 1024 * 1024
    # Unknown chip: conservative tiles that still clear most rooflines.
    return 512, 1024, 1024, 48 * 1024 * 1024


# --------------------------------------------------------------------------
# Kernels
# --------------------------------------------------------------------------
def _fc_relu_single_k_kernel(x_ref, w_ref, b_ref, o_ref):
    # x: (tm, Kp) bf16   w: (Kp, tn) bf16   b: (1, tn) f32   o: (tm, tn)
    acc = jnp.dot(x_ref[...], w_ref[...], preferred_element_type=jnp.float32)
    o_ref[...] = jnp.maximum(acc + b_ref[...], 0.0).astype(o_ref.dtype)


def _fc_relu_ksplit_inplace_kernel(x_ref, w_ref, b_ref, o_ref):
    # f32 output: accumulate directly in the (VMEM-resident) output block.
    k = pl.program_id(2)

    @pl.when(k == 0)
    def _init():
        # Bias-initialized accumulator: no zeros, no epilogue bias add.
        o_ref[...] = jnp.broadcast_to(b_ref[...], o_ref.shape)

    o_ref[...] += jnp.dot(x_ref[...], w_ref[...],
                          preferred_element_type=jnp.float32)

    @pl.when(k == pl.num_programs(2) - 1)
    def _epilogue():
        o_ref[...] = jnp.maximum(o_ref[...], 0.0)


def _fc_relu_ksplit_scratch_kernel(x_ref, w_ref, b_ref, o_ref, acc_ref):
    # Non-f32 output: accumulate in an f32 scratch, cast in the epilogue.
    k = pl.program_id(2)

    @pl.when(k == 0)
    def _init():
        acc_ref[...] = jnp.broadcast_to(b_ref[...], acc_ref.shape)

    acc_ref[...] += jnp.dot(x_ref[...], w_ref[...],
                            preferred_element_type=jnp.float32)

    @pl.when(k == pl.num_programs(2) - 1)
    def _epilogue():
        o_ref[...] = jnp.maximum(acc_ref[...], 0.0).astype(o_ref.dtype)


# --------------------------------------------------------------------------
# pallas_call wrapper
# --------------------------------------------------------------------------
@functools.partial(
    jax.jit,
    static_argnames=("tm", "tn", "tk", "single_k", "out_features",
                     "vmem_limit"))
def _fc_apply(x, w_kn, b_row, *, tm, tn, tk, single_k, out_features,
              vmem_limit):
    B, K = x.shape
    Kp, Np = w_kn.shape
    Bp = _round_up(B, tm)
    out_dtype = x.dtype

    # Cast / pad x only when necessary (skip extra HBM round trips).
    x_p = x if x.dtype == _COMPUTE_DTYPE else x.astype(_COMPUTE_DTYPE)
    if Bp != B or Kp != K:
        x_p = jnp.pad(x_p, ((0, Bp - B), (0, Kp - K)))

    grid_m = Bp // tm
    grid_n = Np // tn

    if single_k:
        grid = (grid_m, grid_n)
        in_specs = [
            pl.BlockSpec((tm, Kp), lambda i, j: (i, 0)),     # x tile
            pl.BlockSpec((Kp, tn), lambda i, j: (0, j)),     # weight tile (K,N)
            pl.BlockSpec((1, tn), lambda i, j: (0, j)),      # bias tile
        ]
        out_specs = pl.BlockSpec((tm, tn), lambda i, j: (i, j))
        kernel = _fc_relu_single_k_kernel
        scratch = []
        dim_sem = ("parallel", "parallel")
    else:
        grid_k = Kp // tk
        grid = (grid_m, grid_n, grid_k)
        in_specs = [
            pl.BlockSpec((tm, tk), lambda i, j, k: (i, k)),  # x tile
            pl.BlockSpec((tk, tn), lambda i, j, k: (k, j)),  # weight tile (K,N)
            pl.BlockSpec((1, tn), lambda i, j, k: (0, j)),   # bias tile
        ]
        out_specs = pl.BlockSpec((tm, tn), lambda i, j, k: (i, j))
        if out_dtype == jnp.float32:
            kernel = _fc_relu_ksplit_inplace_kernel
            scratch = []
        else:
            kernel = _fc_relu_ksplit_scratch_kernel
            scratch = [pltpu.VMEM((tm, tn), jnp.float32)]
        dim_sem = ("parallel", "parallel", "arbitrary")

    cost = pl.CostEstimate(
        flops=2 * Bp * Kp * Np,
        bytes_accessed=(Bp * Kp * 2 * grid_n        # x re-streamed per N block
                        + Kp * Np * 2 * grid_m      # w re-streamed per M block
                        + Np * 4 * grid_m           # bias
                        + Bp * Np * jnp.dtype(out_dtype).itemsize),
        transcendentals=0)

    out_p = pl.pallas_call(
        kernel,
        out_shape=jax.ShapeDtypeStruct((Bp, Np), out_dtype),
        grid_spec=pltpu.PrefetchScalarGridSpec(
            num_scalar_prefetch=0,
            grid=grid,
            in_specs=in_specs,
            out_specs=out_specs,
            scratch_shapes=scratch,
        ),
        compiler_params=pltpu.CompilerParams(
            dimension_semantics=dim_sem,
            vmem_limit_bytes=vmem_limit,
        ),
        cost_estimate=cost,
    )(x_p, w_kn, b_row)

    return out_p[:B, :out_features]


# --------------------------------------------------------------------------
# Module-style wrapper (caches the transposed / cast / padded weight)
# --------------------------------------------------------------------------
class FCBlockPallas:
    """Pallas equivalent of nn.Sequential(nn.Linear(in, out), nn.ReLU())."""

    def __init__(self, weight, bias, *, tm=None, tn=None, tk=None):
        # weight: (out_features, in_features)  (PyTorch convention)
        # bias:   (out_features,)
        N, K = weight.shape
        assert bias.shape == (N,)
        tm_d, tn_d, tk_d, vmem_d = _chip_config()
        self._tm_default = tm if tm is not None else tm_d
        tn = tn if tn is not None else tn_d
        tk = tk if tk is not None else tk_d
        self.vmem_limit = vmem_d

        # N tile: clamp for small layers, keep lane-dense (multiple of 128).
        self.tn = min(tn, _round_up(N, 128))
        self.Np = _round_up(N, self.tn)

        # K tile: collapse the K grid axis entirely when K fits one tile.
        Kp128 = _round_up(K, 128)
        if Kp128 <= _SINGLE_K_MAX:
            self.tk = Kp128
            self.single_k = True
        else:
            self.tk = min(tk, Kp128)
            self.single_k = False
        self.Kp = _round_up(K, self.tk)

        self.N, self.K = N, K

        # One-time weight transform (cached across calls): transpose PyTorch
        # (out,in) -> (in,out) = (K,N), cast to bf16, zero-pad to tile grid.
        w_kn = jnp.asarray(weight).T.astype(_COMPUTE_DTYPE)
        w_kn = jnp.pad(w_kn, ((0, self.Kp - K), (0, self.Np - N)))
        b_row = jnp.pad(jnp.asarray(bias).astype(jnp.float32),
                        (0, self.Np - N)).reshape(1, self.Np)
        self.w_kn = jax.block_until_ready(w_kn)
        self.b_row = jax.block_until_ready(b_row)

    def __call__(self, x):
        orig_shape = x.shape
        if x.ndim != 2:
            x = x.reshape(-1, orig_shape[-1])
        B, K = x.shape
        assert K == self.K, "x last dim must equal in_features"

        # M tile: multiple of 16 (bf16 sublane packing), clamped for small B.
        tm = min(self._tm_default, _round_up(B, 16))
        Bp = _round_up(B, tm)

        # Megacore-friendly: keep >=2 blocks on a parallel axis (v7x has 2 TCs).
        tn = self.tn
        if Bp // tm == 1 and self.Np // tn == 1 and self.Np % 256 == 0:
            tn = self.Np // 2

        out = _fc_apply(x, self.w_kn, self.b_row,
                        tm=tm, tn=tn, tk=self.tk,
                        single_k=self.single_k,
                        out_features=self.N,
                        vmem_limit=self.vmem_limit)
        if len(orig_shape) != 2:
            out = out.reshape(orig_shape[:-1] + (self.N,))
        return out


# --------------------------------------------------------------------------
# Self-test
# --------------------------------------------------------------------------
if __name__ == "__main__":
    # Small shapes consistent with FCBlock(in_features, out_features).
    B, in_features, out_features = 8, 32, 64

    key = jax.random.PRNGKey(0)
    kx, kw, kb = jax.random.split(key, 3)

    x = jax.random.normal(kx, (B, in_features), dtype=jnp.float32)
    bound = 1.0 / (in_features ** 0.5)
    weight = jax.random.uniform(
        kw, (out_features, in_features), minval=-bound, maxval=bound,
        dtype=jnp.float32)
    bias = jax.random.uniform(
        kb, (out_features,), minval=-bound, maxval=bound, dtype=jnp.float32)

    block = FCBlockPallas(weight, bias)
    out = block(x)
    out = jax.block_until_ready(out)
    assert out.shape == (B, out_features)

    # Reference with bf16 operands, f32 accumulation (matches MXU behaviour).
    xb = x.astype(jnp.bfloat16).astype(jnp.float32)
    wb = weight.astype(jnp.bfloat16).astype(jnp.float32)
    ref = jnp.maximum(xb @ wb.T + bias, 0.0)
    assert jnp.allclose(out, ref, atol=1e-3, rtol=1e-3)

    # Sanity vs full-precision reference (bf16 streaming tolerance).
    # TODO(synk): streamed operands are bf16 (f32 accumulation); not
    # bit-identical to PyTorch's f32 nn.Linear.
    ref_f32 = jnp.maximum(x @ weight.T + bias, 0.0)
    assert jnp.allclose(out, ref_f32, atol=3e-2, rtol=3e-2)

    print("KERNEL_OK")
</pallas_src>

<mosaic_0001>
module attributes {stable_mosaic.version = 11 : i64} {
  func.func @_fc_relu_single_k_kernel(%arg0: i32, %arg1: i32, %arg2: memref<16x128xbf16, #tpu.memory_space<vmem>>, %arg3: memref<128x128xbf16, #tpu.memory_space<vmem>>, %arg4: memref<1x128xf32, #tpu.memory_space<vmem>>, %arg5: memref<16x128xf32, #tpu.memory_space<vmem>>) attributes {dimension_semantics = [#tpu.dimension_semantics<parallel>, #tpu.dimension_semantics<parallel>], iteration_bounds = array<i64: 1, 1>, scalar_prefetch = 0 : i64, scratch_operands = 0 : i64, tpu.core_type = #tpu.core_type<tc>, window_params = [{transform_indices = @transform_0, window_bounds = array<i64: 16, 128>}, {transform_indices = @transform_1, window_bounds = array<i64: 128, 128>}, {transform_indices = @transform_2, window_bounds = array<i64: 1, 128>}, {transform_indices = @transform_3, window_bounds = array<i64: 16, 128>}]} {
    %c0 = arith.constant 0 : index
    %c0_0 = arith.constant 0 : index
    %0 = vector.load %arg2[%c0, %c0_0] : memref<16x128xbf16, #tpu.memory_space<vmem>>, vector<16x128xbf16>
    %c0_1 = arith.constant 0 : index
    %c0_2 = arith.constant 0 : index
    %1 = vector.load %arg3[%c0_1, %c0_2] : memref<128x128xbf16, #tpu.memory_space<vmem>>, vector<128x128xbf16>
    %cst = arith.constant dense<0.000000e+00> : vector<16x128xf32>
    %2 = tpu.matmul %0, %1, %cst {dimension_numbers = #tpu.dot_dimension_numbers<[1], [0], [0], [1], [0, 0, 1, 1], [], []>} : vector<16x128xbf16>, vector<128x128xbf16>, vector<16x128xf32> -> vector<16x128xf32>
    %c0_3 = arith.constant 0 : index
    %c0_4 = arith.constant 0 : index
    %3 = vector.load %arg4[%c0_3, %c0_4] : memref<1x128xf32, #tpu.memory_space<vmem>>, vector<1x128xf32>
    %4 = vector.broadcast %3 : vector<1x128xf32> to vector<16x128xf32>
    %5 = arith.addf %2, %4 : vector<16x128xf32>
    %cst_5 = arith.constant 0.000000e+00 : f32
    %6 = vector.broadcast %cst_5 : f32 to vector<16x128xf32>
    %7 = arith.maximumf %5, %6 : vector<16x128xf32>
    %c0_6 = arith.constant 0 : index
    %c0_7 = arith.constant 0 : index
    %8 = vector.load %arg5[%c0_6, %c0_7] : memref<16x128xf32, #tpu.memory_space<vmem>>, vector<16x128xf32>
    tpu.vector_store %arg5[%c0_6, %c0_7], %7 {strides = array<i32>} : memref<16x128xf32, #tpu.memory_space<vmem>>, vector<16x128xf32>,
    return
  }
  func.func @transform_0(%arg0: i32, %arg1: i32) -> (i32, i32) {
    %c0_i32 = arith.constant 0 : i32
    %c0_i32_0 = arith.constant 0 : i32
    return %arg0, %c0_i32 : i32, i32
  }
  func.func @transform_1(%arg0: i32, %arg1: i32) -> (i32, i32) {
    %c0_i32 = arith.constant 0 : i32
    %c0_i32_0 = arith.constant 0 : i32
    return %c0_i32, %arg1 : i32, i32
  }
  func.func @transform_2(%arg0: i32, %arg1: i32) -> (i32, i32) {
    %c0_i32 = arith.constant 0 : i32
    %c0_i32_0 = arith.constant 0 : i32
    return %c0_i32, %arg1 : i32, i32
  }
  func.func @transform_3(%arg0: i32, %arg1: i32) -> (i32, i32) {
    %c0_i32 = arith.constant 0 : i32
    return %arg0, %arg1 : i32, i32
  }
}

</mosaic_0001>

<bundles_post_ra>
// kernel: _fc_apply.1
= control target key start
LH: loop header
LB: loop body
LE: loop exit
PB: predicated region body
PF: predicated region fallthrough
CT: control target
= control target key end

     0   :  { %8 = vsyncpa [#allocation3], 0  ;;  %s235_s12 = smov [#allocation2]   ;;  %s284_s0 = inlined_call_operand.vmem [shape: bf16[16,128], index: 0, kind: input, shape index: {}]   ;;  %s285_s1 = inlined_call_operand.hbm [shape: bf16[128,128], index: 1, kind: input, shape index: {}]   ;;  %s286_s2 = inlined_call_operand.vmem [shape: f32[1,128], index: 2, kind: input, shape index: {}]   ;;  %s287_s3 = inlined_call_operand.vmem [shape: f32[16,128], index: 3, kind: output, shape index: {}]  }
   0x1   :  { %s16_s13 = sshll.u32 %s235_s12, 4  ;;  %s211_s16 = scalar_lea.hbm %s285_s1, 1024  ;;  %s17_s13 = int_to_ptr.vmem [resolvable:$true] %s16_s13 }
   0x2   :  { %p212_p0 = scmp.ne.s32.totalorder %s285_s1, %s211_s16  ;;  %p215_p1 = scmp.lt.u32.totalorder %s211_s16, %s285_s1 }
   0x4   :  { %p217_p2 = pnand %p215_p1, %p212_p0 }
   0x6   :  { %220 = shalt.err (!%p217_p2)
}
   0x7   :  { %s221_s21 = scalar_lea.vmem %s17_s13, 1024  ;;  %p226_p4 = scmp.lt.s32.totalorder %s17_s13, %s17_s13 }
   0x8   :  { %p222_p3 = scmp.ne.s32.totalorder %s17_s13, %s221_s21  ;;  %p227_p5 = scmp.lt.s32.totalorder %s221_s21, %s221_s21 }
   0xa   :  { %p228_p6 = por %p227_p5, %p226_p4 }
   0xc   :  { %p229_p7 = pnand %p228_p6, %p222_p3 }
   0xe   :  { %232 = shalt.err (!%p229_p7)
}
   0xf   :  { %s236_s22 = smov 64   ;;  %s237_s23 = smov 4  }
  0x10   :  { %22 = dma.hbm_to_vmem [thread:$0]  %s285_s1, 1024, %s17_s13, [#allocation3], %s236_s22, %s236_s22, %s237_s23  }
  0x11   :  { %233 = dma.done.wait [#allocation3], 1024  }
  0x12   :  { %234 = vsyncadd [#allocation3], 4294966272  ;;  %v238_v0 = vmov 0.0   ;;  %vm239_vm0 = vmmov 0   ;;  %v202_v1 = vld [vmem:[#allocation2] sm:$0xff]   ;;  %v203_v2 = vld [vmem:[#allocation2 + $0x8] sm:$0xff]  }
  0x13   :  { %177 = vmatprep.subr.bf16.mxu0 %v238_v0  ;;  %193 = vmatprep.mubr.msk.bf16.mxu0 %vm239_vm0, %v238_v0  ;;  %v204_v3 = vld [vmem:[#allocation2 + $0x10] sm:$0xff]   ;;  %v205_v4 = vld [vmem:[#allocation2 + $0x18] sm:$0xff]   ;;  %v206_v5 = vld [vmem:[#allocation2 + $0x20] sm:$0xff]  }
  0x14   :  { %178 = vmatpush3.bf16.msra.mxu0 %v202_v1  ;;  %v207_v6 = vld [vmem:[#allocation2 + $0x28] sm:$0xff]   ;;  %v208_v7 = vld [vmem:[#allocation2 + $0x30] sm:$0xff]   ;;  %v209_v8 = vld [vmem:[#allocation2 + $0x38] sm:$0xff]  }
  0x15   :  { %179 = vmatprep.subr.bf16.mxu0 %v238_v0  ;;  %v210_v9 = vld [vmem:[%s284_s0] sm:$0xff]  }
  0x16   :  { %v158_v10 = vld [vmem:[%s286_s2] ss:$0 sm:$0xff] }
  0x18   :  { %180 = vmatpush3.bf16.msra.mxu0 %v203_v2 }
  0x19   :  { %181 = vmatprep.subr.bf16.mxu0 %v238_v0 }
  0x1c   :  { %182 = vmatpush3.bf16.msra.mxu0 %v204_v3 }
  0x1d   :  { %183 = vmatprep.subr.bf16.mxu0 %v238_v0 }
  0x20   :  { %184 = vmatpush3.bf16.msra.mxu0 %v205_v4 }
  0x21   :  { %185 = vmatprep.subr.bf16.mxu0 %v238_v0 }
  0x24   :  { %186 = vmatpush3.bf16.msra.mxu0 %v206_v5 }
  0x25   :  { %187 = vmatprep.subr.bf16.mxu0 %v238_v0 }
  0x28   :  { %188 = vmatpush3.bf16.msra.mxu0 %v207_v6 }
  0x29   :  { %189 = vmatprep.subr.bf16.mxu0 %v238_v0 }
  0x2c   :  { %190 = vmatpush3.bf16.msra.mxu0 %v208_v7 }
  0x2d   :  { %191 = vmatprep.subr.bf16.mxu0 %v238_v0 }
  0x30   :  { %192 = vmatpush3.bf16.msra.mxu0 %v209_v8 }
  0x33   :  { %194 = vmatmul.mubr.bf16.vlgmr.msra.gmra.mrb[0].mxu0 %v210_v9 }
 0x106   :  { %v142_v11 = vpop.f32.mrb[0].mxu0 }
 0x107   :  { %v143_v12 = vadd.f32 %v158_v10, %v142_v11  ;;  %v195_v13 = vpop.f32.mrb[1].mxu0 }
 0x108   :  { %v145_v14 = vpop.f32.mrb[2].mxu0 }
 0x109   :  { %v149_v15 = vmax.f32 %v143_v12, 0.0  ;;  %v146_v16 = vadd.f32 %v158_v10, %v145_v14  ;;  %v196_v17 = vpop.f32.mrb[3].mxu0 }
 0x10b   :  { %151 = vst [vmem:[%s287_s3] sm:$0xff] %v149_v15  ;;  %v150_v18 = vmax.f32 %v146_v16, 0.0 }
 0x10d   :  { %152 = vst [vmem:[%s287_s3 + $0x8] sm:$0xff] %v150_v18 }
 0x10e   :  { %157 = vsyncpa [#allocation3], 1 }

</bundles_post_ra>
